<compile_context>
chip_gen: v7x
topology: tpu7x:2x2x1
jax: 0.10.0
libtpu: 0.0.40
codegen_flags: <defaults>
</compile_context>

<pallas_src>
import functools

import numpy as np

import jax
import jax.numpy as jnp
from jax.experimental import pallas as pl
from jax.experimental.pallas import tpu as pltpu


# ---------------------------------------------------------------------------
# Kernels
# ---------------------------------------------------------------------------

def _conv3x3_roll_kernel(wm_ref, x_ref, o_ref, *, W, Lpad):
    # wm_ref: (9, Lpad) f32 VMEM -- tap k weight * in-bounds mask per position
    # x_ref:  (TB, Lpad) f32 VMEM -- TB images, each flattened to Lpad lanes
    # o_ref:  (TB, Lpad) f32 VMEM -- lane-dense output tile
    x = x_ref[...]

    # Hoist the 9 masked-weight row loads (each (1, Lpad)) out of the tap loop.
    wm = [wm_ref[pl.ds(k, 1), :] for k in range(9)]

    # Centre tap: no shift; use it to initialise the accumulator.
    acc = x * wm[4]

    for di in (-1, 0, 1):
        for dj in (-1, 0, 1):
            if di == 0 and dj == 0:
                continue
            # shifted[p] = x[(p + di*W + dj) mod Lpad] via a static XLU lane
            # roll.  Every position where the wrap (or the cross-row bleed at
            # j = 0 / W-1, or a pad lane) would contaminate the result has a
            # zero in the corresponding masked-weight row, so zero-padding
            # semantics are preserved with no per-element select.
            s = di * W + dj
            k = 3 * (di + 1) + (dj + 1)
            shifted = pltpu.roll(x, shift=(-s) % Lpad, axis=1)
            acc = acc + shifted * wm[k]

    o_ref[...] = acc.astype(o_ref.dtype)


def _conv3x3_mxu_kernel(wband_ref, x_ref, o_ref):
    # One MXU matmul per tile: out = x @ W_band.  W_band already encodes the
    # 3x3 taps, the zero-padding boundary conditions and the lane padding, so
    # the VPU does no per-element work at all.
    o_ref[...] = jnp.dot(
        x_ref[...], wband_ref[...], preferred_element_type=jnp.float32
    ).astype(o_ref.dtype)


# ---------------------------------------------------------------------------
# Wrapper-side precomputation (static index patterns cached on H, W, Lpad)
# ---------------------------------------------------------------------------

@functools.lru_cache(maxsize=None)
def _tap_masks(H, W, Lpad):
    """(9, Lpad) f32: mask[k, p] = 1 iff tap k at output position p is in-bounds
    (pad lanes p >= H*W are all-zero)."""
    L = H * W
    i = np.arange(L) // W
    j = np.arange(L) % W
    rows = np.zeros((9, Lpad), np.float32)
    k = 0
    for di in (-1, 0, 1):
        for dj in (-1, 0, 1):
            m = (i + di >= 0) & (i + di < H) & (j + dj >= 0) & (j + dj < W)
            rows[k, :L] = m.astype(np.float32)
            k += 1
    return rows


def _build_masked_weights(w_flat, H, W, Lpad):
    masks = jnp.asarray(_tap_masks(H, W, Lpad))           # (9, Lpad), static
    return masks * w_flat.reshape(9, 1)                   # (9, Lpad)


@functools.lru_cache(maxsize=None)
def _band_index_arrays(H, W):
    """Static (q, p, k) index triples of the banded conv matrix (in-bounds taps)."""
    qs, ps, ks = [], [], []
    for i in range(H):
        for j in range(W):
            p = i * W + j
            for di in (-1, 0, 1):
                for dj in (-1, 0, 1):
                    ii, jj = i + di, j + dj
                    if 0 <= ii < H and 0 <= jj < W:
                        qs.append(ii * W + jj)
                        ps.append(p)
                        ks.append(3 * (di + 1) + (dj + 1))
    return (np.asarray(qs, np.int32), np.asarray(ps, np.int32),
            np.asarray(ks, np.int32))


def _build_band_matrix(w_flat, H, W, Lpad):
    """(Lpad, Lpad) f32 with W_band[q, p] = weight of input pixel q for output p."""
    qs, ps, ks = _band_index_arrays(H, W)
    wband = jnp.zeros((Lpad, Lpad), jnp.float32)
    return wband.at[qs, ps].add(w_flat[ks])


# ---------------------------------------------------------------------------
# Generation-aware tiling
# ---------------------------------------------------------------------------

def _chip_profile():
    kind = ""
    try:
        kind = jax.devices()[0].device_kind.lower()
    except Exception:
        pass
    if "v7" in kind:       # 2 TCs/chip, 64 MiB physical VMEM per TC
        return dict(generation="v7x", tile_budget=4 << 20, num_cores=2,
                    vmem_cap=48 << 20)
    if "v6" in kind:       # 1 TC, 128 MiB VMEM, 32 MiB scoped default
        return dict(generation="v6e", tile_budget=4 << 20, num_cores=1,
                    vmem_cap=96 << 20)
    if "v5e" in kind or ("v5" in kind and "lite" in kind):
        return dict(generation="v5e", tile_budget=2 << 20, num_cores=1,
                    vmem_cap=64 << 20)
    return dict(generation="unknown", tile_budget=2 << 20, num_cores=1,
                vmem_cap=32 << 20)


def _choose_batch_tile(n, bytes_per_image, *, tile_budget_bytes, num_cores):
    """Images per grid step.

    * Largest tile within the per-generation VMEM budget (per-step overhead
      amortisation is the dominant lever for this memory-bound kernel).
    * On 2-TC parts only, additionally split so both TensorCores get work
      (prefer >= 2 steps per core, never shrinking tiles below ~1 MiB unless
      that is the only way to give each core a step).
    * Result is ALWAYS a multiple of 8 or equal to n (sublane block rule).
    """
    bpi = max(bytes_per_image, 1)
    tb = max(1, min(n, tile_budget_bytes // bpi))

    if num_cores > 1 and n > 1:
        min_tb = max(1, (1 << 20) // bpi)              # keep tiles >= ~1 MiB
        for steps in (2 * num_cores, num_cores):       # prefer 2 steps/core
            cand = n // steps
            if cand >= min_tb:
                tb = min(tb, cand)
                break
        else:
            cand = n // num_cores                      # tiny workload: 1 step/core
            if cand >= 8:                              # only if block stays legal
                tb = min(tb, cand)

    tb = min(tb, n)
    if tb < n:
        # 8-aligned sublane block (round up if the budget forced tb < 8).
        tb = max(8, (tb // 8) * 8)
        if tb >= n:
            tb = n
    return tb


# ---------------------------------------------------------------------------
# Forward
# ---------------------------------------------------------------------------

_MXU_MAX_LPAD = 1024   # banded matrix is Lpad^2 * 4 B; cap it at 4 MiB


def detection_head_forward(x, weight, *, mode="auto"):
    """DetectionHead.forward (nn.Conv2d(1, 1, 3, padding=1, bias=False)).

    x:      (N, 1, H, W) float32
    weight: (1, 1, 3, 3) float32
    mode:   "auto" | "roll" | "mxu"
    returns (N, 1, H, W) float32
    """
    N, C, H, W = x.shape
    assert C == 1, "DetectionHead conv is 1->1 channel"
    L = H * W
    Lpad = ((L + 127) // 128) * 128        # lane-dense last dim

    prof = _chip_profile()
    use_mxu = (mode == "mxu") or (
        mode == "auto" and prof["generation"] == "v7x" and Lpad <= _MXU_MAX_LPAD
    )

    # Layout plumbing only: contiguous reshape is a free view; pad lanes are
    # added only when H*W is not a multiple of 128 (their values are never
    # read with a non-zero weight).
    x_flat = x.reshape(N, L).astype(jnp.float32)
    if Lpad != L:
        x_flat = jnp.pad(x_flat, ((0, 0), (0, Lpad - L)))
    w_flat = weight.reshape(9).astype(jnp.float32)

    TB = _choose_batch_tile(N, Lpad * 4,
                            tile_budget_bytes=prof["tile_budget"],
                            num_cores=prof["num_cores"])
    assert TB % 8 == 0 or TB == N, (TB, N)
    grid_n = pl.cdiv(N, TB)

    if use_mxu:
        const_in = _build_band_matrix(w_flat, H, W, Lpad)          # (Lpad, Lpad)
        const_spec = pl.BlockSpec((Lpad, Lpad), lambda n: (0, 0))
        const_bytes = Lpad * Lpad * 4
        kernel = _conv3x3_mxu_kernel
    else:
        const_in = _build_masked_weights(w_flat, H, W, Lpad)       # (9, Lpad)
        const_spec = pl.BlockSpec((9, Lpad), lambda n: (0, 0))
        const_bytes = 16 * Lpad * 4          # 9 rows pad to 16 sublanes in VMEM
        kernel = functools.partial(_conv3x3_roll_kernel, W=W, Lpad=Lpad)

    # Explicit scoped-VMEM limit: double-buffered in + out tiles + constants
    # + headroom, clamped to a per-generation safe cap.
    vmem_needed = 4 * TB * Lpad * 4 + 2 * const_bytes + (4 << 20)
    vmem_limit = min(max(vmem_needed, 32 << 20), prof["vmem_cap"])

    out = pl.pallas_call(
        kernel,
        out_shape=jax.ShapeDtypeStruct((N, Lpad), jnp.float32),
        grid=(grid_n,),
        in_specs=[
            const_spec,                                     # constant across grid
            pl.BlockSpec((TB, Lpad), lambda n: (n, 0)),     # TB images / step
        ],
        out_specs=pl.BlockSpec((TB, Lpad), lambda n: (n, 0)),
        compiler_params=pltpu.CompilerParams(
            dimension_semantics=("parallel",),
            vmem_limit_bytes=vmem_limit,
        ),
    )(const_in, x_flat)

    if Lpad != L:
        out = out[:, :L]
    return out.reshape(N, 1, H, W)


def _init_weight(key):
    # Deterministic init matching nn.Conv2d's kaiming-uniform bound:
    # fan_in = 1 * 3 * 3 = 9, bound = 1/sqrt(fan_in) = 1/3.
    bound = 1.0 / 3.0
    return jax.random.uniform(
        key, (1, 1, 3, 3), minval=-bound, maxval=bound, dtype=jnp.float32
    )


if __name__ == "__main__":
    key = jax.random.PRNGKey(0)
    k_w, k_x, k_x2 = jax.random.split(key, 3)

    weight = _init_weight(k_w)
    x = jax.random.normal(k_x, (16, 1, 16, 16), dtype=jnp.float32)

    def ref_conv(inp, w):
        return jax.lax.conv_general_dilated(
            inp, w, window_strides=(1, 1), padding=((1, 1), (1, 1)),
            dimension_numbers=("NCHW", "OIHW", "NCHW"))

    y_ref = ref_conv(x, weight)

    # Generation-tuned default path (roll on v5e/v6e, MXU on v7x).
    y = detection_head_forward(x, weight)
    jax.block_until_ready(y)
    assert y.shape == (16, 1, 16, 16)
    assert jnp.allclose(y, y_ref, atol=1e-2, rtol=1e-2)   # loose: auto may be MXU

    # Exercise both formulations explicitly regardless of the detected chip.
    y_roll = detection_head_forward(x, weight, mode="roll")
    y_mxu = detection_head_forward(x, weight, mode="mxu")
    jax.block_until_ready((y_roll, y_mxu))
    assert jnp.allclose(y_roll, y_ref, atol=1e-5, rtol=1e-5)
    # MXU path tolerance is looser in case the matmul runs at reduced f32
    # precision; structural errors in the banded matrix would be O(1).
    assert jnp.allclose(y_mxu, y_ref, atol=1e-2, rtol=1e-2)

    # Non-128-multiple H*W (lane-padding path) and a batch that is not a
    # multiple of 8 (TB == N branch of the tile chooser).
    x2 = jax.random.normal(k_x2, (6, 1, 12, 12), dtype=jnp.float32)
    y2 = detection_head_forward(x2, weight, mode="roll")
    jax.block_until_ready(y2)
    assert jnp.allclose(y2, ref_conv(x2, weight), atol=1e-5, rtol=1e-5)

    print("KERNEL_OK")
</pallas_src>

<mosaic_0001>
module attributes {stable_mosaic.version = 11 : i64} {
  func.func @_conv3x3_roll_kernel(%arg0: i32, %arg1: memref<9x256xf32, #tpu.memory_space<vmem>>, %arg2: memref<16x256xf32, #tpu.memory_space<vmem>>, %arg3: memref<16x256xf32, #tpu.memory_space<vmem>>) attributes {dimension_semantics = [#tpu.dimension_semantics<parallel>], iteration_bounds = array<i64: 1>, scalar_prefetch = 0 : i64, scratch_operands = 0 : i64, tpu.core_type = #tpu.core_type<tc>, window_params = [{pipeline_mode = #tpu.pipeline_mode<synchronous>, transform_indices = @transform_0, window_bounds = array<i64: 9, 256>}, {transform_indices = @transform_1, window_bounds = array<i64: 16, 256>}, {transform_indices = @transform_2, window_bounds = array<i64: 16, 256>}]} {
    %c0 = arith.constant 0 : index
    %c0_0 = arith.constant 0 : index
    %0 = vector.load %arg2[%c0, %c0_0] : memref<16x256xf32, #tpu.memory_space<vmem>>, vector<16x256xf32>
    %c0_1 = arith.constant 0 : index
    %c0_2 = arith.constant 0 : index
    %1 = vector.load %arg1[%c0_1, %c0_2] : memref<9x256xf32, #tpu.memory_space<vmem>>, vector<1x256xf32>
    %c1 = arith.constant 1 : index
    %c0_3 = arith.constant 0 : index
    %2 = vector.load %arg1[%c1, %c0_3] : memref<9x256xf32, #tpu.memory_space<vmem>>, vector<1x256xf32>
    %c2 = arith.constant 2 : index
    %c0_4 = arith.constant 0 : index
    %3 = vector.load %arg1[%c2, %c0_4] : memref<9x256xf32, #tpu.memory_space<vmem>>, vector<1x256xf32>
    %c3 = arith.constant 3 : index
    %c0_5 = arith.constant 0 : index
    %4 = vector.load %arg1[%c3, %c0_5] : memref<9x256xf32, #tpu.memory_space<vmem>>, vector<1x256xf32>
    %c4 = arith.constant 4 : index
    %c0_6 = arith.constant 0 : index
    %5 = vector.load %arg1[%c4, %c0_6] : memref<9x256xf32, #tpu.memory_space<vmem>>, vector<1x256xf32>
    %c5 = arith.constant 5 : index
    %c0_7 = arith.constant 0 : index
    %6 = vector.load %arg1[%c5, %c0_7] : memref<9x256xf32, #tpu.memory_space<vmem>>, vector<1x256xf32>
    %c6 = arith.constant 6 : index
    %c0_8 = arith.constant 0 : index
    %7 = vector.load %arg1[%c6, %c0_8] : memref<9x256xf32, #tpu.memory_space<vmem>>, vector<1x256xf32>
    %c7 = arith.constant 7 : index
    %c0_9 = arith.constant 0 : index
    %8 = vector.load %arg1[%c7, %c0_9] : memref<9x256xf32, #tpu.memory_space<vmem>>, vector<1x256xf32>
    %c8 = arith.constant 8 : index
    %c0_10 = arith.constant 0 : index
    %9 = vector.load %arg1[%c8, %c0_10] : memref<9x256xf32, #tpu.memory_space<vmem>>, vector<1x256xf32>
    %10 = vector.broadcast %5 : vector<1x256xf32> to vector<16x256xf32>
    %11 = arith.mulf %0, %10 : vector<16x256xf32>
    %c17_i32 = arith.constant 17 : i32
    %12 = tpu.dynamic_rotate %0 by %c17_i32 dim 1 : vector<16x256xf32>, i32 -> vector<16x256xf32>
    %13 = vector.broadcast %1 : vector<1x256xf32> to vector<16x256xf32>
    %14 = arith.mulf %12, %13 : vector<16x256xf32>
    %15 = arith.addf %11, %14 : vector<16x256xf32>
    %c16_i32 = arith.constant 16 : i32
    %16 = tpu.dynamic_rotate %0 by %c16_i32 dim 1 : vector<16x256xf32>, i32 -> vector<16x256xf32>
    %17 = vector.broadcast %2 : vector<1x256xf32> to vector<16x256xf32>
    %18 = arith.mulf %16, %17 : vector<16x256xf32>
    %19 = arith.addf %15, %18 : vector<16x256xf32>
    %c15_i32 = arith.constant 15 : i32
    %20 = tpu.dynamic_rotate %0 by %c15_i32 dim 1 : vector<16x256xf32>, i32 -> vector<16x256xf32>
    %21 = vector.broadcast %3 : vector<1x256xf32> to vector<16x256xf32>
    %22 = arith.mulf %20, %21 : vector<16x256xf32>
    %23 = arith.addf %19, %22 : vector<16x256xf32>
    %c1_i32 = arith.constant 1 : i32
    %24 = tpu.dynamic_rotate %0 by %c1_i32 dim 1 : vector<16x256xf32>, i32 -> vector<16x256xf32>
    %25 = vector.broadcast %4 : vector<1x256xf32> to vector<16x256xf32>
    %26 = arith.mulf %24, %25 : vector<16x256xf32>
    %27 = arith.addf %23, %26 : vector<16x256xf32>
    %c255_i32 = arith.constant 255 : i32
    %28 = tpu.dynamic_rotate %0 by %c255_i32 dim 1 : vector<16x256xf32>, i32 -> vector<16x256xf32>
    %29 = vector.broadcast %6 : vector<1x256xf32> to vector<16x256xf32>
    %30 = arith.mulf %28, %29 : vector<16x256xf32>
    %31 = arith.addf %27, %30 : vector<16x256xf32>
    %c241_i32 = arith.constant 241 : i32
    %32 = tpu.dynamic_rotate %0 by %c241_i32 dim 1 : vector<16x256xf32>, i32 -> vector<16x256xf32>
    %33 = vector.broadcast %7 : vector<1x256xf32> to vector<16x256xf32>
    %34 = arith.mulf %32, %33 : vector<16x256xf32>
    %35 = arith.addf %31, %34 : vector<16x256xf32>
    %c240_i32 = arith.constant 240 : i32
    %36 = tpu.dynamic_rotate %0 by %c240_i32 dim 1 : vector<16x256xf32>, i32 -> vector<16x256xf32>
    %37 = vector.broadcast %8 : vector<1x256xf32> to vector<16x256xf32>
    %38 = arith.mulf %36, %37 : vector<16x256xf32>
    %39 = arith.addf %35, %38 : vector<16x256xf32>
    %c239_i32 = arith.constant 239 : i32
    %40 = tpu.dynamic_rotate %0 by %c239_i32 dim 1 : vector<16x256xf32>, i32 -> vector<16x256xf32>
    %41 = vector.broadcast %9 : vector<1x256xf32> to vector<16x256xf32>
    %42 = arith.mulf %40, %41 : vector<16x256xf32>
    %43 = arith.addf %39, %42 : vector<16x256xf32>
    %c0_11 = arith.constant 0 : index
    %c0_12 = arith.constant 0 : index
    %44 = vector.load %arg3[%c0_11, %c0_12] : memref<16x256xf32, #tpu.memory_space<vmem>>, vector<16x256xf32>
    tpu.vector_store %arg3[%c0_11, %c0_12], %43 {strides = array<i32>} : memref<16x256xf32, #tpu.memory_space<vmem>>, vector<16x256xf32>,
    return
  }
  func.func @transform_0(%arg0: i32) -> (i32, i32) {
    %c0_i32 = arith.constant 0 : i32
    %c0_i32_0 = arith.constant 0 : i32
    %c0_i32_1 = arith.constant 0 : i32
    return %c0_i32, %c0_i32_0 : i32, i32
  }
  func.func @transform_1(%arg0: i32) -> (i32, i32) {
    %c0_i32 = arith.constant 0 : i32
    %c0_i32_0 = arith.constant 0 : i32
    return %arg0, %c0_i32 : i32, i32
  }
  func.func @transform_2(%arg0: i32) -> (i32, i32) {
    %c0_i32 = arith.constant 0 : i32
    %c0_i32_0 = arith.constant 0 : i32
    return %arg0, %c0_i32 : i32, i32
  }
}

</mosaic_0001>

<bundles_post_ra>
// kernel: tpu_custom_call.1
= control target key start
LH: loop header
LB: loop body
LE: loop exit
PB: predicated region body
PF: predicated region fallthrough
CT: control target
= control target key end

     0   :  { %7 = vsyncpa [#allocation3], 0  ;;  %s712_s0 = inlined_call_operand.hbm [shape: f32[9,256], index: 0, kind: input, shape index: {}]   ;;  %s713_s1 = inlined_call_operand.hbm [shape: f32[16,256], index: 1, kind: input, shape index: {}]   ;;  %s714_s2 = inlined_call_operand.hbm [shape: f32[16,256], index: 2, kind: output, shape index: {}]  }
   0x1   :  { %8 = vsyncpa [#allocation6], 0 }
   0x2   :  { %9 = vsyncpa [#allocation4], 0  ;;  %s440_s9 = smov [#allocation2]   ;;  %s368_s13 = scalar_lea.hbm %s712_s0, 512 }
   0x3   :  { %s15_s10 = sshll.u32 %s440_s9, 4  ;;  %p369_p0 = scmp.ne.s32.totalorder %s712_s0, %s368_s13  ;;  %s16_s10 = int_to_ptr.vmem [resolvable:$true] %s15_s10 }
   0x4   :  { %p372_p1 = scmp.lt.u32.totalorder %s368_s13, %s712_s0 }
   0x6   :  { %p374_p2 = pnand %p372_p1, %p369_p0 }
   0x8   :  { %377 = shalt.err (!%p374_p2)
}
   0x9   :  { %s378_s18 = scalar_lea.vmem %s16_s10, 512  ;;  %p383_p4 = scmp.lt.s32.totalorder %s16_s10, %s16_s10 }
   0xa   :  { %p379_p3 = scmp.ne.s32.totalorder %s16_s10, %s378_s18  ;;  %p384_p5 = scmp.lt.s32.totalorder %s378_s18, %s378_s18 }
   0xc   :  { %p385_p6 = por %p384_p5, %p383_p4 }
   0xe   :  { %p386_p7 = pnand %p385_p6, %p379_p3 }
  0x10   :  { %389 = shalt.err (!%p386_p7)
}
  0x11   :  { %s441_s19 = smov 256   ;;  %s442_s20 = smov 16  }
  0x12   :  { %21 = dma.hbm_to_vmem [thread:$0]  %s712_s0, 512, %s16_s10, [#allocation3], %s441_s19, %s441_s19, %s442_s20  }
  0x13   :  { %s443_s23 = smov [#allocation5]   ;;  %s390_s27 = scalar_lea.hbm %s713_s1, 512 }
  0x14   :  { %s27_s24 = sshll.u32 %s443_s23, 4  ;;  %p391_p8 = scmp.ne.s32.totalorder %s713_s1, %s390_s27  ;;  %s28_s24 = int_to_ptr.vmem [resolvable:$true] %s27_s24 }
  0x15   :  { %p394_p9 = scmp.lt.u32.totalorder %s390_s27, %s713_s1 }
  0x17   :  { %p396_p10 = pnand %p394_p9, %p391_p8 }
  0x19   :  { %399 = shalt.err (!%p396_p10)
}
  0x1a   :  { %s400_s4 = scalar_lea.vmem %s28_s24, 512  ;;  %p405_p12 = scmp.lt.s32.totalorder %s28_s24, %s28_s24 }
  0x1b   :  { %p401_p11 = scmp.ne.s32.totalorder %s28_s24, %s400_s4  ;;  %p406_p13 = scmp.lt.s32.totalorder %s400_s4, %s400_s4 }
  0x1d   :  { %p407_p0 = por %p406_p13, %p405_p12 }
  0x1f   :  { %p408_p1 = pnand %p407_p0, %p401_p11 }
  0x21   :  { %411 = shalt.err (!%p408_p1)
}
  0x22   :  { %33 = dma.hbm_to_vmem [thread:$0]  %s713_s1, 512, %s28_s24, [#allocation6], %s441_s19, %s441_s19, %s442_s20  }
  0x23   :  { %434 = dma.done.wait [#allocation3], 512  }
  0x24   :  { %435 = vsyncadd [#allocation3], 4294966784 }
  0x25   :  { %436 = dma.done.wait [#allocation6], 512  }
  0x26   :  { %437 = vsyncadd [#allocation6], 4294966784  ;;  %v497_v0 = vld [vmem:[#allocation5 + $0x8] sm:$0xff]  ;;  %v499_v1 = vld [vmem:[#allocation5] sm:$0xff]  ;;  %s444_s6 = smov 17   ;;  %s445_s1 = smov 15   ;;  %v62_v14 = vlaneseq }
  0x27   :  { %80 = vrot.lane.b32.xlu1 %v497_v0, %s444_s6  ;;  %76 = vrot.lane.b32.xlu0 %v499_v1, %s444_s6  ;;  %v503_v2 = vld [vmem:[#allocation5 + $0x18] sm:$0xff]  ;;  %v505_v3 = vld [vmem:[#allocation5 + $0x10] sm:$0xff]  ;;  %s446_s7 = smov 1   ;;  %s447_s8 = smov 127  }
  0x28   :  { %s448_s9 = smov 113   ;;  %s449_s10 = smov 112   ;;  %v63_v17 = vshrl.u32 %v62_v14, 7  ;;  %v52_v22 = vld [vmem:[#allocation2 + $0x4] ss:$8 sm:$0x3] }
  0x29   :  { %s450_s11 = smov 111   ;;  %v557_v23 = vand.u32 127, %v62_v14  ;;  %v44_v26 = vld [vmem:[#allocation2] ss:$8 sm:$0x3]  ;;  %s451_s12 = smov [#allocation7]  }
  0x2a   :  { %v553_v20 = vsub.s32 0, %v63_v17  ;;  %v555_v21 = vsub.s32 1, %v63_v17  ;;  %v46_v29 = vld [vmem:[#allocation2 + $0x1] ss:$8 sm:$0x3]  ;;  %s343_s13 = sshll.u32 %s451_s12, 4  ;;  %s344_s13 = int_to_ptr.vmem [resolvable:$true] %s343_s13 }
  0x2b   :  { %82 = vrot.lane.b32.xlu1 %v503_v2, %s444_s6  ;;  %78 = vrot.lane.b32.xlu0 %v505_v3, %s444_s6  ;;  %v48_v30 = vld [vmem:[#allocation2 + $0x2] ss:$8 sm:$0x3]  ;;  %vm86_vm0 = vcmp.lt.s32.totalorder %v557_v23, 17  ;;  %vm118_vm1 = vcmp.lt.s32.totalorder %v557_v23, 16  ;;  %vm150_vm2 = vcmp.lt.s32.totalorder %v557_v23, 15  ;;  %p417_p3 = scmp.lt.s32.totalorder %s344_s13, %s344_s13 }
  0x2c   :  { %v65_v27 = vrot.slane %v52_v22, %v553_v20  ;;  %v69_v28 = vrot.slane %v52_v22, %v555_v21  ;;  %v95_v31 = vrot.slane %v44_v26, %v553_v20  ;;  %v99_v34 = vrot.slane %v44_v26, %v555_v21  ;;  %v50_v41 = vld [vmem:[#allocation2 + $0x3] ss:$8 sm:$0x3]  ;;  %v54_v42 = vld [vmem:[#allocation2 + $0x5] ss:$8 sm:$0x3] }
  0x2d   :  { %v127_v35 = vrot.slane %v46_v29, %v553_v20  ;;  %v131_v36 = vrot.slane %v46_v29, %v555_v21  ;;  %v159_v39 = vrot.slane %v48_v30, %v553_v20  ;;  %v163_v40 = vrot.slane %v48_v30, %v555_v21  ;;  %v56_v55 = vld [vmem:[#allocation2 + $0x6] ss:$8 sm:$0x3]  ;;  %v58_v56 = vld [vmem:[#allocation2 + $0x7] ss:$8 sm:$0x3] }
  0x2e   :  { %v73_v37 = vmul.f32 %v69_v28, %v497_v0  ;;  %v72_v38 = vmul.f32 %v65_v27, %v499_v1  ;;  %v74_v47 = vmul.f32 %v65_v27, %v505_v3  ;;  %v75_v48 = vmul.f32 %v69_v28, %v503_v2  ;;  %s412_s14 = scalar_lea.vmem %s344_s13, 512 }
  0x2f   :  { %112 = vrot.lane.b32.xlu1 %v505_v3, %s442_s20  ;;  %110 = vrot.lane.b32.xlu0 %v499_v1, %s442_s20  ;;  %vm182_vm3 = vcmp.lt.s32.totalorder %v557_v23, 1  ;;  %vm214_vm4 = vcmp.lt.s32.totalorder %v557_v23, 127  ;;  %v191_v51 = vrot.slane %v50_v41, %v553_v20  ;;  %v195_v52 = vrot.slane %v50_v41, %v555_v21  ;;  %p413_p2 = scmp.ne.s32.totalorder %s344_s13, %s412_s14  ;;  %p418_p4 = scmp.lt.s32.totalorder %s412_s14, %s412_s14 }
  0x30   :  { %v223_v53 = vrot.slane %v54_v42, %v553_v20  ;;  %v227_v54 = vrot.slane %v54_v42, %v555_v21  ;;  %vm246_vm5 = vcmp.lt.s32.totalorder %v557_v23, 113  ;;  %vm278_vm6 = vcmp.lt.s32.totalorder %v557_v23, 112 }
  0x31   :  { %vm310_vm7 = vcmp.lt.s32.totalorder %v557_v23, 111  ;;  %p419_p5 = por %p418_p4, %p417_p3 }
  0x33   :  { %116 = vrot.lane.b32.xlu1 %v503_v2, %s442_s20  ;;  %114 = vrot.lane.b32.xlu0 %v497_v0, %s442_s20  ;;  %p420_p6 = pnand %p419_p5, %p413_p2 }
  0x37   :  { %144 = vrot.lane.b32.xlu1 %v505_v3, %s445_s1  ;;  %142 = vrot.lane.b32.xlu0 %v499_v1, %s445_s1 }
  0x3b   :  { %148 = vrot.lane.b32.xlu1 %v503_v2, %s445_s1  ;;  %146 = vrot.lane.b32.xlu0 %v497_v0, %s445_s1 }
  0x3f   :  { %176 = vrot.lane.b32.xlu1 %v505_v3, %s446_s7  ;;  %174 = vrot.lane.b32.xlu0 %v499_v1, %s446_s7 }
  0x43   :  { %180 = vrot.lane.b32.xlu1 %v503_v2, %s446_s7  ;;  %178 = vrot.lane.b32.xlu0 %v497_v0, %s446_s7 }
  0x47   :  { %208 = vrot.lane.b32.xlu1 %v505_v3, %s447_s8  ;;  %206 = vrot.lane.b32.xlu0 %v499_v1, %s447_s8 }
  0x4b   :  { %212 = vrot.lane.b32.xlu1 %v503_v2, %s447_s8  ;;  %210 = vrot.lane.b32.xlu0 %v497_v0, %s447_s8 }
  0x4f   :  { %240 = vrot.lane.b32.xlu1 %v505_v3, %s448_s9  ;;  %238 = vrot.lane.b32.xlu0 %v499_v1, %s448_s9 }
  0x53   :  { %244 = vrot.lane.b32.xlu1 %v503_v2, %s448_s9  ;;  %242 = vrot.lane.b32.xlu0 %v497_v0, %s448_s9 }
  0x57   :  { %272 = vrot.lane.b32.xlu1 %v505_v3, %s449_s10  ;;  %270 = vrot.lane.b32.xlu0 %v499_v1, %s449_s10 }
  0x5b   :  { %276 = vrot.lane.b32.xlu1 %v503_v2, %s449_s10  ;;  %274 = vrot.lane.b32.xlu0 %v497_v0, %s449_s10 }
  0x5f   :  { %304 = vrot.lane.b32.xlu1 %v505_v3, %s450_s11  ;;  %302 = vrot.lane.b32.xlu0 %v499_v1, %s450_s11  ;;  %v606_v3 = vrot.slane %v56_v55, %v553_v20 }
  0x63   :  { %308 = vrot.lane.b32.xlu1 %v503_v2, %s450_s11  ;;  %306 = vrot.lane.b32.xlu0 %v497_v0, %s450_s11 }
  0x99   :  { %v81_v4 = vpop.permute.xlu1 %80  ;;  %v77_v5 = vpop.permute.xlu0 %76 }
  0x9a   :  { %v87_v43 = vsel %vm86_vm0, %v77_v5, %v81_v4  ;;  %v89_v44 = vsel %vm86_vm0, %v81_v4, %v77_v5  ;;  %v609_v4 = vrot.slane %v56_v55, %v555_v21  ;;  %v612_v5 = vrot.slane %v58_v56, %v553_v20 }
  0x9b   :  { %v102_v57 = vmul.f32 %v95_v31, %v89_v44  ;;  %v103_v58 = vmul.f32 %v99_v34, %v87_v43 }
  0x9d   :  { %v83_v6 = vpop.permute.xlu1 %82  ;;  %v79_v7 = vpop.permute.xlu0 %78  ;;  %v106_v26 = vadd.f32 %v102_v57, %v72_v38  ;;  %v107_v27 = vadd.f32 %v103_v58, %v73_v37 }
  0x9e   :  { %v88_v45 = vsel %vm86_vm0, %v79_v7, %v83_v6  ;;  %v90_v46 = vsel %vm86_vm0, %v83_v6, %v79_v7  ;;  %v615_v6 = vrot.slane %v58_v56, %v555_v21 }
  0x9f   :  { %v104_v59 = vmul.f32 %v95_v31, %v90_v46  ;;  %v105_v60 = vmul.f32 %v99_v34, %v88_v45 }
  0xa1   :  { %v113_v8 = vpop.permute.xlu1 %112  ;;  %v111_v9 = vpop.permute.xlu0 %110  ;;  %v108_v28 = vadd.f32 %v104_v59, %v74_v47 }
  0xa5   :  { %v117_v10 = vpop.permute.xlu1 %116  ;;  %v115_v11 = vpop.permute.xlu0 %114 }
  0xa6   :  { %v120_v61 = vsel %vm118_vm1, %v113_v8, %v117_v10  ;;  %v122_v62 = vsel %vm118_vm1, %v117_v10, %v113_v8  ;;  %v119_v63 = vsel %vm118_vm1, %v111_v9, %v115_v11  ;;  %v121_v0 = vsel %vm118_vm1, %v115_v11, %v111_v9 }
  0xa7   :  { %v136_v11 = vmul.f32 %v127_v35, %v122_v62  ;;  %v137_v14 = vmul.f32 %v131_v36, %v120_v61  ;;  %v134_v17 = vmul.f32 %v127_v35, %v121_v0  ;;  %v135_v22 = vmul.f32 %v131_v36, %v119_v63 }
  0xa9   :  { %v541_v12 = vpop.permute.xlu1 %144  ;;  %v543_v13 = vpop.permute.xlu0 %142  ;;  %v140_v37 = vadd.f32 %v136_v11, %v108_v28 }
  0xad   :  { %v545_v15 = vpop.permute.xlu1 %148  ;;  %v547_v16 = vpop.permute.xlu0 %146 }
  0xae   :  { %v152_v7 = vsel %vm150_vm2, %v541_v12, %v545_v15  ;;  %v154_v8 = vsel %vm150_vm2, %v545_v15, %v541_v12  ;;  %v151_v9 = vsel %vm150_vm2, %v543_v13, %v547_v16  ;;  %v153_v10 = vsel %vm150_vm2, %v547_v16, %v543_v13 }
  0xaf   :  { %v109_v12 = vadd.f32 %v105_v60, %v75_v48  ;;  %v168_v15 = vmul.f32 %v159_v39, %v154_v8  ;;  %v169_v29 = vmul.f32 %v163_v40, %v152_v7  ;;  %v166_v30 = vmul.f32 %v159_v39, %v153_v10 }
  0xb0   :  { %v167_v31 = vmul.f32 %v163_v40, %v151_v9  ;;  %v138_v39 = vadd.f32 %v134_v17, %v106_v26  ;;  %v139_v40 = vadd.f32 %v135_v22, %v107_v27 }
  0xb1   :  { %v549_v18 = vpop.permute.xlu1 %176  ;;  %v551_v19 = vpop.permute.xlu0 %174  ;;  %v141_v38 = vadd.f32 %v137_v14, %v109_v12  ;;  %v172_v48 = vadd.f32 %v168_v15, %v140_v37  ;;  %v60_v14 = vld [vmem:[#allocation2 + $0x10] ss:$8 sm:$0x3] }
  0xb2   :  { %v170_v56 = vadd.f32 %v166_v30, %v138_v39  ;;  %v171_v57 = vadd.f32 %v167_v31, %v139_v40 }
  0xb3   :  { %v173_v55 = vadd.f32 %v169_v29, %v141_v38 }
  0xb5   :  { %v559_v24 = vpop.permute.xlu1 %180  ;;  %v561_v25 = vpop.permute.xlu0 %178 }
  0xb6   :  { %v184_v13 = vsel %vm182_vm3, %v549_v18, %v559_v24  ;;  %v186_v16 = vsel %vm182_vm3, %v559_v24, %v549_v18  ;;  %v183_v35 = vsel %vm182_vm3, %v551_v19, %v561_v25  ;;  %v185_v36 = vsel %vm182_vm3, %v561_v25, %v551_v19 }
  0xb7   :  { %v200_v25 = vmul.f32 %v191_v51, %v186_v16  ;;  %v201_v43 = vmul.f32 %v195_v52, %v184_v13  ;;  %v198_v44 = vmul.f32 %v191_v51, %v185_v36  ;;  %v199_v45 = vmul.f32 %v195_v52, %v183_v35 }
  0xb9   :  { %v568_v32 = vpop.permute.xlu1 %208  ;;  %v570_v33 = vpop.permute.xlu0 %206  ;;  %v204_v52 = vadd.f32 %v200_v25, %v172_v48  ;;  %v205_v61 = vadd.f32 %v201_v43, %v173_v55  ;;  %v202_v62 = vadd.f32 %v198_v44, %v170_v56  ;;  %v203_v63 = vadd.f32 %v199_v45, %v171_v57 }
  0xbd   :  { %v213_v49 = vpop.permute.xlu1 %212  ;;  %v211_v50 = vpop.permute.xlu0 %210 }
  0xbe   :  { %v216_v42 = vsel %vm214_vm4, %v568_v32, %v213_v49  ;;  %v218_v18 = vsel %vm214_vm4, %v213_v49, %v568_v32  ;;  %v215_v24 = vsel %vm214_vm4, %v570_v33, %v211_v50  ;;  %v217_v19 = vsel %vm214_vm4, %v211_v50, %v570_v33 }
  0xbf   :  { %v232_v58 = vmul.f32 %v223_v53, %v216_v42  ;;  %v233_v32 = vmul.f32 %v227_v54, %v218_v18  ;;  %v230_v49 = vmul.f32 %v223_v53, %v215_v24  ;;  %v231_v59 = vmul.f32 %v227_v54, %v217_v19 }
  0xc1   :  { %v241_v1 = vpop.permute.xlu1 %240  ;;  %v239_v2 = vpop.permute.xlu0 %238  ;;  %v236_v17 = vadd.f32 %v232_v58, %v204_v52  ;;  %v237_v22 = vadd.f32 %v233_v32, %v205_v61  ;;  %v234_v26 = vadd.f32 %v230_v49, %v202_v62  ;;  %v235_v27 = vadd.f32 %v231_v59, %v203_v63 }
  0xc5   :  { %v245_v34 = vpop.permute.xlu1 %244  ;;  %v243_v41 = vpop.permute.xlu0 %242 }
  0xc6   :  { %v248_v60 = vsel %vm246_vm5, %v241_v1, %v245_v34  ;;  %v250_v33 = vsel %vm246_vm5, %v245_v34, %v241_v1  ;;  %v247_v50 = vsel %vm246_vm5, %v239_v2, %v243_v41  ;;  %v249_v51 = vsel %vm246_vm5, %v243_v41, %v239_v2 }
  0xc7   :  { %v264_v2 = vmul.f32 %v606_v3, %v248_v60  ;;  %v265_v9 = vmul.f32 %v609_v4, %v250_v33  ;;  %v262_v10 = vmul.f32 %v606_v3, %v247_v50  ;;  %v263_v11 = vmul.f32 %v609_v4, %v249_v51 }
  0xc8   :  { %v319_v3 = vrot.slane %v60_v14, %v553_v20  ;;  %v323_v4 = vrot.slane %v60_v14, %v555_v21 }
  0xc9   :  { %v273_v46 = vpop.permute.xlu1 %272  ;;  %v271_v47 = vpop.permute.xlu0 %270  ;;  %v268_v34 = vadd.f32 %v264_v2, %v236_v17  ;;  %v269_v41 = vadd.f32 %v265_v9, %v237_v22  ;;  %v266_v13 = vadd.f32 %v262_v10, %v234_v26  ;;  %v267_v16 = vadd.f32 %v263_v11, %v235_v27 }
  0xcd   :  { %v277_v0 = vpop.permute.xlu1 %276  ;;  %v275_v7 = vpop.permute.xlu0 %274 }
  0xce   :  { %v280_v53 = vsel %vm278_vm6, %v273_v46, %v277_v0  ;;  %v282_v54 = vsel %vm278_vm6, %v277_v0, %v273_v46  ;;  %v279_v1 = vsel %vm278_vm6, %v271_v47, %v275_v7  ;;  %v281_v8 = vsel %vm278_vm6, %v275_v7, %v271_v47 }
  0xcf   :  { %v296_v28 = vmul.f32 %v612_v5, %v280_v53  ;;  %v297_v12 = vmul.f32 %v615_v6, %v282_v54  ;;  %v294_v15 = vmul.f32 %v612_v5, %v279_v1  ;;  %v295_v29 = vmul.f32 %v615_v6, %v281_v8 }
  0xd1   :  { %v305_v30 = vpop.permute.xlu1 %304  ;;  %v303_v31 = vpop.permute.xlu0 %302  ;;  %v300_v35 = vadd.f32 %v296_v28, %v268_v34  ;;  %v301_v36 = vadd.f32 %v297_v12, %v269_v41  ;;  %v298_v37 = vadd.f32 %v294_v15, %v266_v13  ;;  %v299_v38 = vadd.f32 %v295_v29, %v267_v16 }
  0xd5   :  { %v309_v39 = vpop.permute.xlu1 %308  ;;  %v307_v5 = vpop.permute.xlu0 %306 }
  0xd6   :  { %v312_v6 = vsel %vm310_vm7, %v305_v30, %v309_v39  ;;  %v314_v40 = vsel %vm310_vm7, %v309_v39, %v305_v30  ;;  %v311_v20 = vsel %vm310_vm7, %v303_v31, %v307_v5  ;;  %v313_v21 = vsel %vm310_vm7, %v307_v5, %v303_v31 }
  0xd7   :  { %v328_v42 = vmul.f32 %v319_v3, %v312_v6  ;;  %v329_v18 = vmul.f32 %v323_v4, %v314_v40  ;;  %v326_v24 = vmul.f32 %v319_v3, %v311_v20  ;;  %v327_v19 = vmul.f32 %v323_v4, %v313_v21 }
  0xd9   :  { %v332_v25 = vadd.f32 %v328_v42, %v300_v35  ;;  %v333_v43 = vadd.f32 %v329_v18, %v301_v36  ;;  %v330_v44 = vadd.f32 %v326_v24, %v298_v37  ;;  %v331_v45 = vadd.f32 %v327_v19, %v299_v38 }
  0xdb   :  { %336 = vst [vmem:[#allocation7 + $0x10] sm:$0xff] %v332_v25  ;;  %337 = vst [vmem:[#allocation7 + $0x18] sm:$0xff] %v333_v43 }
  0xdc   :  { %334 = vst [vmem:[#allocation7] sm:$0xff] %v330_v44  ;;  %335 = vst [vmem:[#allocation7 + $0x8] sm:$0xff] %v331_v45 }
  0xdd   :  { %423 = shalt.err (!%p420_p6)
}
  0xde   :  { %s424_s17 = scalar_lea.hbm %s714_s2, 512 }
  0xdf   :  { %p425_p7 = scmp.ne.s32.totalorder %s714_s2, %s424_s17  ;;  %p428_p8 = scmp.lt.u32.totalorder %s424_s17, %s714_s2 }
  0xe1   :  { %p430_p9 = pnand %p428_p8, %p425_p7 }
  0xe3   :  { %433 = shalt.err (!%p430_p9)
}
  0xe4   :  { %349 = dma.vmem_to_hbm [thread:$0]  %s344_s13, 512, %s714_s2, [#allocation4], %s441_s19, %s441_s19, %s442_s20  }
  0xe5   :  { %438 = dma.done.wait [#allocation4], 512  }
  0xe6   :  { %439 = vsyncadd [#allocation4], 4294966784 }
  0xe7   :  { %353 = vsyncpa [#allocation3], 1 }
  0xe8   :  { %354 = vsyncpa [#allocation6], 1 }
  0xe9   :  { %355 = vsyncpa [#allocation4], 1 }

</bundles_post_ra>
